<compile_context>
chip_gen: v5e
topology: v5e:2x2
jax: 0.10.0
libtpu: 0.0.40
codegen_flags: <defaults>
</compile_context>

<pallas_src>
from functools import partial

import jax
import jax.numpy as jnp
from jax.experimental import pallas as pl
from jax.experimental.pallas import tpu as pltpu


def _fbeta_kernel(yhat_ref, y_ref, out_ref, tp_acc, fn_acc, fp_acc, *, in_class):
    t = pl.program_id(1)
    num_t = pl.num_programs(1)

    # Per-sample accumulator init (the pixel-tile axis is the reduction axis).
    @pl.when(t == 0)
    def _():
        tp_acc[...] = jnp.zeros_like(tp_acc)
        fn_acc[...] = jnp.zeros_like(fn_acc)
        fp_acc[...] = jnp.zeros_like(fp_acc)

    y = y_ref[0]                                  # (1, TILE_P) int32
    y_is_in = y == in_class
    y_is_zero = y == 0

    if in_class == 0:
        # After `preds[preds != 0] = 0`, preds is identically 0, so both
        # (preds == in_class) and (preds == 0) are all-True (trace-time case).
        tp_mask = y_is_in
        fn_mask = y_is_in
        fp_mask = y_is_zero
    else:
        logits = yhat_ref[0]                      # (C, TILE_P) f32
        C = logits.shape[0]
        # Channel argmax with torch "first maximal index" semantics, built
        # from max + iota + min.  softmax is strictly monotone per pixel, so
        # running it on raw logits matches argmax(softmax(logits)) exactly.
        maxv = jnp.max(logits, axis=0, keepdims=True)            # (1, TILE_P)
        ch = jax.lax.broadcasted_iota(jnp.int32, logits.shape, 0)
        cand = jnp.where(logits == maxv, ch, jnp.int32(C))
        argmax_idx = jnp.min(cand, axis=0, keepdims=True)        # (1, TILE_P)

        pred_pos = argmax_idx == in_class         # preds==in_class after rewrite
        tp_mask = jnp.logical_and(pred_pos, y_is_in)
        fn_mask = jnp.logical_and(jnp.logical_not(pred_pos), y_is_in)
        fp_mask = jnp.logical_and(pred_pos, y_is_zero)

    # Per-lane int32 partial counts: pure VPU adds in the hot loop, exact
    # (no f32 counting precision loss).
    tp_acc[...] += tp_mask.astype(jnp.int32)
    fn_acc[...] += fn_mask.astype(jnp.int32)
    fp_acc[...] += fp_mask.astype(jnp.int32)

    # Single cross-lane reduction + one lane-dense writeback per sample.
    @pl.when(t == num_t - 1)
    def _():
        tp = jnp.sum(tp_acc[...])
        fn = jnp.sum(fn_acc[...])
        fp = jnp.sum(fp_acc[...])
        lane = jax.lax.broadcasted_iota(jnp.int32, out_ref.shape, 2)
        out_ref[...] = jnp.where(
            lane == 0, tp,
            jnp.where(lane == 1, fn, jnp.where(lane == 2, fp, jnp.int32(0))))


def fbeta(yhat, y, *, in_class, beta=1, eps=1e-06):
    """Pallas implementation of FBeta.forward.

    yhat: (N, C, H, W) float logits, y: (N, H, W) integer labels.
    Returns the scalar F-beta score (eps kept for signature parity; the
    reference forward never uses it).
    """
    del eps  # unused in the reference forward as well
    in_class = int(in_class)
    assert in_class >= 0, "in_class must be a non-negative class index"

    N, C, H, W = yhat.shape
    P = H * W
    LANE = 128

    # ~2 MiB of f32 logits per tile (rounded to a multiple of 128 lanes):
    # double-buffered logits + labels + accumulators stay well under the
    # scoped-VMEM defaults on v5e/v6e/v7x while amortizing per-step overhead.
    tile_target = max(LANE, ((2 << 20) // (4 * C)) // LANE * LANE)
    p_lane = ((P + LANE - 1) // LANE) * LANE
    tile_p = min(tile_target, p_lane)
    num_tiles = pl.cdiv(P, tile_p)
    p_padded = num_tiles * tile_p

    # Free NCHW reshape to a lane-dense flattened pixel axis.
    # Keep f32 for bit-exact parity with the reference (bf16 would halve HBM
    # traffic but can flip near-tie argmaxes).
    yhat_f = yhat.astype(jnp.float32).reshape(N, C, P)
    y_i = y.astype(jnp.int32).reshape(N, 1, P)
    if p_padded > P:
        pad = p_padded - P
        yhat_f = jnp.pad(yhat_f, ((0, 0), (0, 0), (0, pad)))
        # Padded labels = -1: never equal to in_class (>= 0) nor to 0, so the
        # padding contributes nothing to TP/FN/FP.
        y_i = jnp.pad(y_i, ((0, 0), (0, 0), (0, pad)), constant_values=-1)

    kernel = partial(_fbeta_kernel, in_class=in_class)

    counts = pl.pallas_call(
        kernel,
        out_shape=jax.ShapeDtypeStruct((N, 1, LANE), jnp.int32),
        grid_spec=pltpu.PrefetchScalarGridSpec(
            num_scalar_prefetch=0,
            grid=(N, num_tiles),
            in_specs=[
                pl.BlockSpec((1, C, tile_p), lambda n, t: (n, 0, t)),
                pl.BlockSpec((1, 1, tile_p), lambda n, t: (n, 0, t)),
            ],
            out_specs=pl.BlockSpec((1, 1, LANE), lambda n, t: (n, 0, 0)),
            scratch_shapes=[
                pltpu.VMEM((1, tile_p), jnp.int32),
                pltpu.VMEM((1, tile_p), jnp.int32),
                pltpu.VMEM((1, tile_p), jnp.int32),
            ],
        ),
        compiler_params=pltpu.CompilerParams(
            dimension_semantics=("parallel", "arbitrary"),
            vmem_limit_bytes=32 * 1024 * 1024,
        ),
    )(yhat_f, y_i)

    # Exact integer totals across the batch; ratio in f32 (0/0 -> NaN like torch).
    totals = jnp.sum(counts[:, 0, :3], axis=0)
    tp = totals[0].astype(jnp.float32)
    fn = totals[1].astype(jnp.float32)
    fp = totals[2].astype(jnp.float32)
    beta2 = float(beta) ** 2
    f_beta = (1.0 + beta2) * tp / ((1.0 + beta2) * tp + beta2 * fn + fp)
    # TODO(synk): the reference returns .detach().cpu().numpy().item(); the
    # host transfer stays outside the kernel (caller can call float(f_beta)).
    return f_beta


if __name__ == "__main__":
    key = jax.random.PRNGKey(0)
    k_logits, k_labels = jax.random.split(key)

    N, C, H, W = 2, 4, 16, 16
    yhat = jax.random.normal(k_logits, (N, C, H, W), dtype=jnp.float32)
    y = jax.random.randint(k_labels, (N, H, W), 0, C).astype(jnp.int32)

    in_class = 2  # deterministic "module parameter" (constructor arg)
    score = fbeta(yhat, y, in_class=in_class, beta=1, eps=1e-06)
    jax.block_until_ready(score)
    print("KERNEL_OK")
</pallas_src>

<mosaic_0001>
module attributes {stable_mosaic.version = 11 : i64} {
  func.func @_fbeta_kernel(%arg0: i32, %arg1: i32, %arg2: memref<1x4x256xf32, #tpu.memory_space<vmem>>, %arg3: memref<1x1x256xi32, #tpu.memory_space<vmem>>, %arg4: memref<1x1x128xi32, #tpu.memory_space<vmem>>, %arg5: memref<1x256xi32, #tpu.memory_space<vmem>>, %arg6: memref<1x256xi32, #tpu.memory_space<vmem>>, %arg7: memref<1x256xi32, #tpu.memory_space<vmem>>) attributes {dimension_semantics = [#tpu.dimension_semantics<parallel>, #tpu.dimension_semantics<arbitrary>], iteration_bounds = array<i64: 2, 1>, scalar_prefetch = 0 : i64, scratch_operands = 3 : i64, tpu.core_type = #tpu.core_type<tc>, window_params = [{transform_indices = @transform_0, window_bounds = array<i64: 1, 4, 256>}, {transform_indices = @transform_1, window_bounds = array<i64: 1, 1, 256>}, {transform_indices = @transform_2, window_bounds = array<i64: 1, 1, 128>}]} {
    %c0_i32 = arith.constant 0 : i32
    %0 = arith.cmpi eq, %arg1, %c0_i32 : i32
    %1 = arith.extui %0 : i1 to i32
    %c0_i32_0 = arith.constant 0 : i32
    %2 = arith.cmpi ne, %1, %c0_i32_0 : i32
    scf.if %2 {
      %c0_i32_24 = arith.constant 0 : i32
      %41 = vector.broadcast %c0_i32_24 : i32 to vector<1x256xi32>
      %c0_25 = arith.constant 0 : index
      %c0_26 = arith.constant 0 : index
      %42 = vector.load %arg5[%c0_25, %c0_26] : memref<1x256xi32, #tpu.memory_space<vmem>>, vector<1x256xi32>
      tpu.vector_store %arg5[%c0_25, %c0_26], %41 {strides = array<i32>} : memref<1x256xi32, #tpu.memory_space<vmem>>, vector<1x256xi32>,
      %c0_i32_27 = arith.constant 0 : i32
      %43 = vector.broadcast %c0_i32_27 : i32 to vector<1x256xi32>
      %c0_28 = arith.constant 0 : index
      %c0_29 = arith.constant 0 : index
      %44 = vector.load %arg6[%c0_28, %c0_29] : memref<1x256xi32, #tpu.memory_space<vmem>>, vector<1x256xi32>
      tpu.vector_store %arg6[%c0_28, %c0_29], %43 {strides = array<i32>} : memref<1x256xi32, #tpu.memory_space<vmem>>, vector<1x256xi32>,
      %c0_i32_30 = arith.constant 0 : i32
      %45 = vector.broadcast %c0_i32_30 : i32 to vector<1x256xi32>
      %c0_31 = arith.constant 0 : index
      %c0_32 = arith.constant 0 : index
      %46 = vector.load %arg7[%c0_31, %c0_32] : memref<1x256xi32, #tpu.memory_space<vmem>>, vector<1x256xi32>
      tpu.vector_store %arg7[%c0_31, %c0_32], %45 {strides = array<i32>} : memref<1x256xi32, #tpu.memory_space<vmem>>, vector<1x256xi32>,
    } else {
    }
    %c0 = arith.constant 0 : index
    %c0_1 = arith.constant 0 : index
    %c0_2 = arith.constant 0 : index
    %3 = vector.load %arg3[%c0, %c0_1, %c0_2] : memref<1x1x256xi32, #tpu.memory_space<vmem>>, vector<1x1x256xi32>
    %4 = vector.shape_cast %3 : vector<1x1x256xi32> to vector<1x256xi32>
    %c2_i32 = arith.constant 2 : i32
    %5 = vector.broadcast %c2_i32 : i32 to vector<1x256xi32>
    %6 = arith.cmpi eq, %4, %5 : vector<1x256xi32>
    %c0_i32_3 = arith.constant 0 : i32
    %7 = vector.broadcast %c0_i32_3 : i32 to vector<1x256xi32>
    %8 = arith.cmpi eq, %4, %7 : vector<1x256xi32>
    %c0_4 = arith.constant 0 : index
    %c0_5 = arith.constant 0 : index
    %c0_6 = arith.constant 0 : index
    %9 = vector.load %arg2[%c0_4, %c0_5, %c0_6] : memref<1x4x256xf32, #tpu.memory_space<vmem>>, vector<1x4x256xf32>
    %10 = vector.shape_cast %9 : vector<1x4x256xf32> to vector<4x256xf32>
    %cst = arith.constant dense<0xFF800000> : vector<256xf32>
    %11 = vector.multi_reduction <maximumf>, %10, %cst [0] : vector<4x256xf32> to vector<256xf32>
    %12 = vector.shape_cast %11 : vector<256xf32> to vector<1x256xf32>
    %13 = tpu.iota {dimensions = array<i32: 0>} : vector<4x256xi32>
    %14 = vector.broadcast %12 : vector<1x256xf32> to vector<4x256xf32>
    %15 = arith.cmpf oeq, %10, %14 : vector<4x256xf32>
    %c4_i32 = arith.constant 4 : i32
    %16 = vector.broadcast %c4_i32 : i32 to vector<4x256xi32>
    %17 = arith.select %15, %13, %16 : vector<4x256xi1>, vector<4x256xi32>
    %cst_7 = arith.constant dense<2147483647> : vector<256xi32>
    %18 = vector.multi_reduction <minsi>, %17, %cst_7 [0] : vector<4x256xi32> to vector<256xi32>
    %19 = vector.shape_cast %18 : vector<256xi32> to vector<1x256xi32>
    %c2_i32_8 = arith.constant 2 : i32
    %20 = vector.broadcast %c2_i32_8 : i32 to vector<1x256xi32>
    %21 = arith.cmpi eq, %19, %20 : vector<1x256xi32>
    %22 = arith.andi %21, %6 : vector<1x256xi1>
    %cst_9 = arith.constant dense<true> : vector<1x256xi1>
    %23 = arith.xori %21, %cst_9 : vector<1x256xi1>
    %24 = arith.andi %23, %6 : vector<1x256xi1>
    %25 = arith.andi %21, %8 : vector<1x256xi1>
    %c0_10 = arith.constant 0 : index
    %c0_11 = arith.constant 0 : index
    %26 = vector.load %arg5[%c0_10, %c0_11] : memref<1x256xi32, #tpu.memory_space<vmem>>, vector<1x256xi32>
    %27 = arith.extui %22 : vector<1x256xi1> to vector<1x256xi32>
    %28 = arith.addi %26, %27 : vector<1x256xi32>
    %c0_12 = arith.constant 0 : index
    %c0_13 = arith.constant 0 : index
    %29 = vector.load %arg5[%c0_12, %c0_13] : memref<1x256xi32, #tpu.memory_space<vmem>>, vector<1x256xi32>
    tpu.vector_store %arg5[%c0_12, %c0_13], %28 {strides = array<i32>} : memref<1x256xi32, #tpu.memory_space<vmem>>, vector<1x256xi32>,
    %c0_14 = arith.constant 0 : index
    %c0_15 = arith.constant 0 : index
    %30 = vector.load %arg6[%c0_14, %c0_15] : memref<1x256xi32, #tpu.memory_space<vmem>>, vector<1x256xi32>
    %31 = arith.extui %24 : vector<1x256xi1> to vector<1x256xi32>
    %32 = arith.addi %30, %31 : vector<1x256xi32>
    %c0_16 = arith.constant 0 : index
    %c0_17 = arith.constant 0 : index
    %33 = vector.load %arg6[%c0_16, %c0_17] : memref<1x256xi32, #tpu.memory_space<vmem>>, vector<1x256xi32>
    tpu.vector_store %arg6[%c0_16, %c0_17], %32 {strides = array<i32>} : memref<1x256xi32, #tpu.memory_space<vmem>>, vector<1x256xi32>,
    %c0_18 = arith.constant 0 : index
    %c0_19 = arith.constant 0 : index
    %34 = vector.load %arg7[%c0_18, %c0_19] : memref<1x256xi32, #tpu.memory_space<vmem>>, vector<1x256xi32>
    %35 = arith.extui %25 : vector<1x256xi1> to vector<1x256xi32>
    %36 = arith.addi %34, %35 : vector<1x256xi32>
    %c0_20 = arith.constant 0 : index
    %c0_21 = arith.constant 0 : index
    %37 = vector.load %arg7[%c0_20, %c0_21] : memref<1x256xi32, #tpu.memory_space<vmem>>, vector<1x256xi32>
    tpu.vector_store %arg7[%c0_20, %c0_21], %36 {strides = array<i32>} : memref<1x256xi32, #tpu.memory_space<vmem>>, vector<1x256xi32>,
    %c0_i32_22 = arith.constant 0 : i32
    %38 = arith.cmpi eq, %arg1, %c0_i32_22 : i32
    %39 = arith.extui %38 : i1 to i32
    %c0_i32_23 = arith.constant 0 : i32
    %40 = arith.cmpi ne, %39, %c0_i32_23 : i32
    scf.if %40 {
      %c0_24 = arith.constant 0 : index
      %c0_25 = arith.constant 0 : index
      %41 = vector.load %arg5[%c0_24, %c0_25] : memref<1x256xi32, #tpu.memory_space<vmem>>, vector<1x256xi32>
      %42 = vector.shape_cast %41 : vector<1x256xi32> to vector<1x1x256xi32>
      %cst_26 = arith.constant dense<0> : vector<1xi32>
      %43 = vector.multi_reduction <add>, %42, %cst_26 [1, 2] : vector<1x1x256xi32> to vector<1xi32>
      %44 = vector.shape_cast %43 : vector<1xi32> to vector<1x1x1xi32>
      %45 = vector.extract %44[0, 0, 0] : i32 from vector<1x1x1xi32>
      %c0_27 = arith.constant 0 : index
      %c0_28 = arith.constant 0 : index
      %46 = vector.load %arg6[%c0_27, %c0_28] : memref<1x256xi32, #tpu.memory_space<vmem>>, vector<1x256xi32>
      %47 = vector.shape_cast %46 : vector<1x256xi32> to vector<1x1x256xi32>
      %cst_29 = arith.constant dense<0> : vector<1xi32>
      %48 = vector.multi_reduction <add>, %47, %cst_29 [1, 2] : vector<1x1x256xi32> to vector<1xi32>
      %49 = vector.shape_cast %48 : vector<1xi32> to vector<1x1x1xi32>
      %50 = vector.extract %49[0, 0, 0] : i32 from vector<1x1x1xi32>
      %c0_30 = arith.constant 0 : index
      %c0_31 = arith.constant 0 : index
      %51 = vector.load %arg7[%c0_30, %c0_31] : memref<1x256xi32, #tpu.memory_space<vmem>>, vector<1x256xi32>
      %52 = vector.shape_cast %51 : vector<1x256xi32> to vector<1x1x256xi32>
      %cst_32 = arith.constant dense<0> : vector<1xi32>
      %53 = vector.multi_reduction <add>, %52, %cst_32 [1, 2] : vector<1x1x256xi32> to vector<1xi32>
      %54 = vector.shape_cast %53 : vector<1xi32> to vector<1x1x1xi32>
      %55 = vector.extract %54[0, 0, 0] : i32 from vector<1x1x1xi32>
      %56 = tpu.iota {dimensions = array<i32: 2>} : vector<1x1x128xi32>
      %c0_i32_33 = arith.constant 0 : i32
      %57 = vector.broadcast %c0_i32_33 : i32 to vector<1x1x128xi32>
      %58 = arith.cmpi eq, %56, %57 : vector<1x1x128xi32>
      %c1_i32 = arith.constant 1 : i32
      %59 = vector.broadcast %c1_i32 : i32 to vector<1x1x128xi32>
      %60 = arith.cmpi eq, %56, %59 : vector<1x1x128xi32>
      %c2_i32_34 = arith.constant 2 : i32
      %61 = vector.broadcast %c2_i32_34 : i32 to vector<1x1x128xi32>
      %62 = arith.cmpi eq, %56, %61 : vector<1x1x128xi32>
      %c0_i32_35 = arith.constant 0 : i32
      %63 = vector.broadcast %55 : i32 to vector<1x1x128xi32>
      %64 = vector.broadcast %c0_i32_35 : i32 to vector<1x1x128xi32>
      %65 = arith.select %62, %63, %64 : vector<1x1x128xi1>, vector<1x1x128xi32>
      %66 = vector.broadcast %50 : i32 to vector<1x1x128xi32>
      %67 = arith.select %60, %66, %65 : vector<1x1x128xi1>, vector<1x1x128xi32>
      %68 = vector.broadcast %45 : i32 to vector<1x1x128xi32>
      %69 = arith.select %58, %68, %67 : vector<1x1x128xi1>, vector<1x1x128xi32>
      %c0_36 = arith.constant 0 : index
      %c0_37 = arith.constant 0 : index
      %c0_38 = arith.constant 0 : index
      %70 = vector.load %arg4[%c0_36, %c0_37, %c0_38] : memref<1x1x128xi32, #tpu.memory_space<vmem>>, vector<1x1x128xi32>
      tpu.vector_store %arg4[%c0_36, %c0_37, %c0_38], %69 {strides = array<i32>} : memref<1x1x128xi32, #tpu.memory_space<vmem>>, vector<1x1x128xi32>,
    } else {
    }
    return
  }
  func.func @transform_0(%arg0: i32, %arg1: i32) -> (i32, i32, i32) {
    %c0_i32 = arith.constant 0 : i32
    %c0_i32_0 = arith.constant 0 : i32
    return %arg0, %c0_i32, %arg1 : i32, i32, i32
  }
  func.func @transform_1(%arg0: i32, %arg1: i32) -> (i32, i32, i32) {
    %c0_i32 = arith.constant 0 : i32
    %c0_i32_0 = arith.constant 0 : i32
    return %arg0, %c0_i32, %arg1 : i32, i32, i32
  }
  func.func @transform_2(%arg0: i32, %arg1: i32) -> (i32, i32, i32) {
    %c0_i32 = arith.constant 0 : i32
    %c0_i32_0 = arith.constant 0 : i32
    %c0_i32_1 = arith.constant 0 : i32
    return %arg0, %c0_i32, %c0_i32_0 : i32, i32, i32
  }
}

</mosaic_0001>

<bundles_post_ra>
// kernel: tpu_custom_call.1
= control target key start
LH: loop header
LB: loop body
LE: loop exit
PB: predicated region body
PF: predicated region fallthrough
CT: control target
= control target key end

     0   :  { %7 = vsyncpa [#allocation6], 0  ;;  %s1013_s0 = inlined_call_operand.hbm [shape: f32[2,4,256], index: 0, kind: input, shape index: {}]   ;;  %s1014_s1 = inlined_call_operand.hbm [shape: s32[2,1,256], index: 1, kind: input, shape index: {}]   ;;  %s1015_s2 = inlined_call_operand.hbm [shape: s32[2,1,128], index: 2, kind: output, shape index: {}]  }
   0x1   :  { %9 = vsyncpa [#allocation6 + $0x1], 0 }
   0x2   :  { %10 = vsyncpa [#allocation9], 0 }
   0x3   :  { %12 = vsyncpa [#allocation9 + $0x1], 0 }
   0x4   :  { %13 = vsyncpa [#allocation7], 0 }
   0x5   :  { %15 = vsyncpa [#allocation7 + $0x1], 0  ;;  %s802_s9 = smov 0   ;;  %s804_s10 = smov 0  }
   0x6   :  { %s806_s11 = smov 0   ;;  %s808_s12 = smov 0  }
   0x7   :  { %s810_s13 = smov 0   ;;  %s812_s14 = smov 0  }
   0x8 LB: > { %s545_s15 = sadd.s32 4294967295, %s782_s14   ;;  %s546_s16 = sadd.s32 4294967294, %s782_s14   ;;  %s782_s14 = sphi %s812_s14, %s21_s14   ;;  %s778_s13 = sphi %s810_s13, %s1031_s13   ;;  %s774_s12 = sphi %s808_s12, %s1030_s12   ;;  %s770_s11 = sphi %s806_s11, %s1029_s11   ;;  %s766_s10 = sphi %s804_s10, %s1028_s10   ;;  %s762_s9 = sphi %s802_s9, %s1027_s9  }
   0x9   : > { %s33_s17 = sadd.s32 1, %s778_s13  ;;  %s42_s18 = sadd.s32 1, %s770_s11 }
   0xa   : > { %p35_p0 = scmp.ge.s32.totalorder %s33_s17, 2  ;;  %p49_p1 = scmp.ne.s32.totalorder %s770_s11, %s766_s10 }
   0xb   : > { %p50_p2 = scmp.eq.s32.totalorder %s782_s14, 0  ;;  %p55_p3 = scmp.ne.s32.totalorder %s766_s10, %s762_s9 }
   0xc   : > { %s1033_s17 = smov (%p35_p0, %s33_s17), 0  ;;  %p56_p5 = scmp.eq.s32.totalorder %s545_s15, 0 }
   0xd   : > { %p843_p4 = por %p50_p2, %p49_p1  ;;  %s37_s20 = ssub.s32 %s778_s13, %s1033_s17 }
   0xe   : > { %p107_p6 = scmp.eq.s32.totalorder %s545_s15, 1  ;;  %p40_p7 = scmp.eq.s32.totalorder %s37_s20, 0 }
   0xf   : > { %p849_p8 = por %p56_p5, %p55_p3  ;;  %p113_p10 = scmp.eq.s32.totalorder %s546_s16, 1 }
  0x10   : > { %p853_p9 = por %p107_p6, %p49_p1  ;;  %p548_p12 = scmp.ge.s32.totalorder %s782_s14, 2 }
  0x11   : > { %s858_s23 = scalar_select %p40_p7, %s770_s11, %s42_s18  }
  0x12   : > { %p860_p11 = por %p113_p10, %p55_p3  ;;  %p583_p13 = scmp.lt.s32.totalorder %s782_s14, 2 }
  0x13   : > { %s133_s25 = sand.u32 1, %s770_s11   ;;  %s559_s27 = sshll.u32 %s778_s13, 3 }
  0x14   : > { %s549_s26 = sshll.u32 %s133_s25, 3  ;;  %s144_s30 = scalar_lea.hbm %s1013_s0, %s559_s27 }
  0x15   : > { %s137_s3 = scalar_lea.vmem [#allocation5], %s549_s26  ;;  %s146_s5 = sshll.u32 %s144_s30, 4  ;;  %s147_s5 = int_to_ptr.hbm [resolvable:$true] %s146_s5 }
  0x16   : > { %s148_s4 = sshll.u32 %s137_s3, 4  ;;  %p873_p0 = pnand %p583_p13, %p843_p4  ;;  %s149_s4 = int_to_ptr.vmem [resolvable:$true] %s148_s4 }
  0x17   : > { %p554_p1 = scmp.ge.s32.totalorder %s782_s14, 1  ;;  %p174_p2 = scmp.lt.s32.totalorder %s782_s14, 3 }
  0x18   : > { %s134_s7 = scalar_lea.sflag [#allocation6], %s133_s25  ;;  %s552_s8 = sshll.u32 %s133_s25, 1 }
  0x19   : > { %575 = dma.hbm_to_vmem [thread:$0]  (!%p873_p0), %s147_s5, 128, %s149_s4, %s134_s7  }
  0x1a   : > { %p175_p3 = pnand %p554_p1, %p174_p2  ;;  %s553_s15 = sshll.u32 %s778_s13, 1 }
  0x1b   : > { %s165_s20 = scalar_lea.hbm %s1014_s1, %s553_s15  ;;  %s159_s26 = scalar_lea.vmem [#allocation8], %s552_s8 }
  0x1c   : > { %s169_s19 = sshll.u32 %s159_s26, 4  ;;  %s167_s27 = sshll.u32 %s165_s20, 4  ;;  %s170_s19 = int_to_ptr.vmem [resolvable:$true] %s169_s19  ;;  %s168_s27 = int_to_ptr.hbm [resolvable:$true] %s167_s27 }
  0x1d   : > { %s156_s28 = scalar_lea.sflag [#allocation9], %s133_s25  ;;  %178 = sbr.rel (%p175_p3) target bundleno = 317 (0x13d), region = 28 }
  0x1e   : > { %578 = dma.hbm_to_vmem [thread:$0]  (!%p873_p0), %s168_s27, 32, %s170_s19, %s156_s28  }
  0x1f   : > { %s888_s29 = sand.u32 (!%p175_p3), 1, %s766_s10  }
  0x20   : > { %s555_s30 = sshll.u32 (!%p175_p3), %s888_s29, 3  ;;  %s181_s3 = scalar_lea.sflag (!%p175_p3), [#allocation6], %s888_s29 }
  0x21   : > { %s184_s4 = scalar_lea.vmem (!%p175_p3), [#allocation5], %s555_s30 }
  0x22   : > { %749 = dma.done.wait (%p849_p8), %s181_s3, 128  }
  0x23   : > { %751 = vsyncadd (%p849_p8), %s181_s3, 4294967168  ;;  %s556_s25 = sshll.u32 %s888_s29, 1  ;;  %s191_s5 = scalar_lea.sflag [#allocation9], %s888_s29 }
  0x24   : > { %s898_s6 = scalar_lea.vmem [#allocation8], %s556_s25 }
  0x25   : > { %753 = dma.done.wait (%p849_p8), %s191_s5, 32  }
  0x26   : > { %755 = vsyncadd (%p849_p8), %s191_s5, 4294967264  ;;  %v226_v0 = vlaneseq  ;;  %v784_v2 = vmov 0   ;;  %v236_v3 = vld [vmem:[%s184_s4] sm:$0xff]  ;;  %vm243_vm1 = vcmask 1043456   ;;  %v785_v14 = vmov 839922192   ;;  %s439_s8 = scalar_lea.hbm %s1015_s2, %s774_s12 }
  0x27   : > { %238 = vst [vmem:[#allocation1] ss:$2 sm:$0xff] %v236_v3  ;;  %v267_v15 = vunpack.c.l.s4 %v785_v14  ;;  %v233_v28 = vld [vmem:[%s898_s6] sm:$0x3]  ;;  %s219_s18 = scalar_lea.vmem [#allocation10], %s888_s29  ;;  %s443_s19 = sshll.u32 %s439_s8, 4  ;;  %s444_s19 = int_to_ptr.hbm [resolvable:$true] %s443_s19 }
  0x28   : > { %vm905_vm0 = vcmp.lt.s32.totalorder %v226_v0, 256  ;;  %v259_v20 = vshrl.u32 %v226_v0, 7  ;;  %vm234_vm3 = vcmp.eq.s32.totalorder %v233_v28, 2  ;;  %vm235_vm8 = vcmp.eq.s32.totalorder %v233_v28, 0  ;;  %s976_s20 = sshll.u32 %s219_s18, 4  ;;  %s431_s12 = scalar_lea.sflag [#allocation7], %s888_s29  ;;  %s442_s20 = int_to_ptr.vmem [resolvable:$true] %s976_s20 }
  0x29   : > { %232 = vst.msk [vmem:[#allocation4] sm:$0x3] %vm905_vm0, %v784_v2  ;;  %v268_v21 = vunpack.c.0.s8 %v267_v15  ;;  %v296_v39 = vsel %vm234_vm3, 1, %v784_v2  ;;  %v307_v47 = vsel %vm235_vm8, 1, %v784_v2  ;;  %s710_s27 = sshra.s32 %s444_s19, 4  ;;  %s716_s4 = scalar_lea.hbm %s1015_s2, 2  ;;  %s711_s27 = int_to_ptr.hbm [resolvable:$true] %s710_s27 }
  0x2a   : > { %230 = vst.msk [vmem:[#allocation2] sm:$0x3] %vm905_vm0, %v784_v2  ;;  %v297_v40 = vperm.slane %v296_v39, 0  ;;  %v298_v43 = vperm.slane %v296_v39, 1  ;;  %v308_v51 = vperm.slane %v307_v47, 0  ;;  %v309_v52 = vperm.slane %v307_v47, 1  ;;  %p717_p7 = scmp.lt.s32.totalorder %s711_s27, %s1015_s2 }
  0x2b   : > { %231 = vst.msk [vmem:[#allocation3] sm:$0x3] %vm905_vm0, %v784_v2  ;;  %v269_v25 = vperm.slane %v259_v20, %v268_v21  ;;  %s712_s28 = scalar_lea.hbm %s711_s27, 1 }
  0x2c   : > { %vm926_vm11 = vcmp.ne.s32.totalorder %v297_v40, 0  ;;  %vm931_vm12 = vcmp.ne.s32.totalorder %v298_v43, 0  ;;  %vm311_vm8 = vcmp.ne.s32.totalorder %v309_v52, 0  ;;  %p713_p4 = scmp.ne.s32.totalorder %s711_s27, %s712_s28  ;;  %p718_p8 = scmp.lt.s32.totalorder %s716_s4, %s712_s28 }
  0x2e   : > { %v239_v4 = vld.sshfl [vmem:[#allocation1] sm:$0xff pattern:$0x75316420]  ;;  %v240_v5 = vld.sshfl [vmem:[#allocation1 + $0x8] sm:$0xff pattern:$0x75316420]  ;;  %p714_p5 = pnand %p713_p4, %p853_p9  ;;  %p719_p10 = por %p718_p8, %p717_p7 }
  0x2f   : > { %v244_v6 = vsel %vm243_vm1, %v239_v4, -inf  ;;  %v251_v7 = vsel %vm243_vm1, %v240_v5, -inf }
  0x30   : > { %v245_v8 = vrot.slane %v244_v6, 4  ;;  %v252_v9 = vrot.slane %v251_v7, 4  ;;  %v333_v5 = vld [vmem:[#allocation4] sm:$0x3]  ;;  %p715_p6 = pneg %p714_p5 }
  0x31   : > { %v314_v56 = vld [vmem:[#allocation2] sm:$0x3] }
  0x32   : > { %v246_v10 = vmax.f32 %v244_v6, %v245_v8  ;;  %v253_v11 = vmax.f32 %v251_v7, %v252_v9  ;;  %v326_v62 = vld [vmem:[#allocation3] sm:$0x3]  ;;  %p720_p13 = pnand %p719_p10, %p715_p6 }
  0x34   : > { %v247_v12 = vrot.slane %v246_v10, 2  ;;  %v254_v13 = vrot.slane %v253_v11, 2 }
  0x36   : > { %v248_v16 = vmax.f32 %v246_v10, %v247_v12  ;;  %v255_v17 = vmax.f32 %v253_v11, %v254_v13 }
  0x38   : > { %v249_v18 = vrot.slane %v248_v16, 1  ;;  %v256_v19 = vrot.slane %v255_v17, 1 }
  0x3a   : > { %v250_v22 = vmax.f32 %v248_v16, %v249_v18  ;;  %v257_v23 = vmax.f32 %v255_v17, %v256_v19 }
  0x3c   : > { %v262_v24 = vrot.slane %v257_v23, 4 }
  0x3e   : > { %v263_v26 = vsel %vm243_vm1, %v250_v22, %v262_v24 }
  0x3f   : > { %vm265_vm2 = vcmp.eq.f32.partialorder %v236_v3, %v263_v26 }
  0x40   : > { %v270_v27 = vsel %vm265_vm2, %v269_v25, 4  ;;  %vm786_vm2 = vmmov 1  }
  0x41   : > { %271 = vst [vmem:[#allocation1] ss:$2 sm:$0xff] %v270_v27 }
  0x48   : > { %v272_v29 = vld.sshfl [vmem:[#allocation1] sm:$0xff pattern:$0x75316420]  ;;  %v273_v30 = vld.sshfl [vmem:[#allocation1 + $0x8] sm:$0xff pattern:$0x75316420] }
  0x49   : > { %v274_v31 = vsel %vm243_vm1, %v272_v29, 2147483647  ;;  %v284_v32 = vsel %vm243_vm1, %v273_v30, 2147483647 }
  0x4a   : > { %v275_v33 = vrot.slane %v274_v31, 4  ;;  %v285_v34 = vrot.slane %v284_v32, 4 }
  0x4c   : > { %vm276_vm4 = vcmp.lt.s32.totalorder %v274_v31, %v275_v33  ;;  %vm286_vm5 = vcmp.lt.s32.totalorder %v284_v32, %v285_v34 }
  0x4d   : > { %v277_v35 = vsel %vm276_vm4, %v274_v31, %v275_v33  ;;  %v287_v36 = vsel %vm286_vm5, %v284_v32, %v285_v34  ;;  %vm318_vm4 = vcmask 1040384  }
  0x4e   : > { %v278_v37 = vrot.slane %v277_v35, 2  ;;  %v288_v38 = vrot.slane %v287_v36, 2 }
  0x50   : > { %vm279_vm6 = vcmp.lt.s32.totalorder %v277_v35, %v278_v37  ;;  %vm289_vm7 = vcmp.lt.s32.totalorder %v287_v36, %v288_v38 }
  0x51   : > { %v280_v41 = vsel %vm279_vm6, %v277_v35, %v278_v37  ;;  %v290_v42 = vsel %vm289_vm7, %v287_v36, %v288_v38  ;;  %vm310_vm6 = vcmp.ne.s32.totalorder %v308_v51, 0 }
  0x52   : > { %v281_v44 = vrot.slane %v280_v41, 1  ;;  %v291_v45 = vrot.slane %v290_v42, 1 }
  0x54   : > { %vm282_vm9 = vcmp.lt.s32.totalorder %v280_v41, %v281_v44  ;;  %vm292_vm10 = vcmp.lt.s32.totalorder %v290_v42, %v291_v45 }
  0x55   : > { %v283_v48 = vsel %vm282_vm9, %v280_v41, %v281_v44  ;;  %v293_v49 = vsel %vm292_vm10, %v290_v42, %v291_v45 }
  0x56   : > { %vm294_vm13 = vcmp.eq.s32.totalorder %v283_v48, 2  ;;  %vm295_vm14 = vcmp.eq.s32.totalorder %v293_v49, 2 }
  0x57   : > { %vm301_vm15 = vmand %vm294_vm13, %vm926_vm11 }
  0x58   : > { %vm302_vm1 = vmand %vm295_vm14, %vm931_vm12  ;;  %v315_v53 = vsel %vm301_vm15, 1, %v784_v2 }
  0x59   : > { %vm303_vm3 = vmxor %vm294_vm13, %vm786_vm2  ;;  %v316_v54 = vsel %vm302_vm1, 1, %v784_v2 }
  0x5a   : > { %vm304_vm5 = vmxor %vm295_vm14, %vm786_vm2  ;;  %v317_v55 = vrot.slane %v316_v54, 7 }
  0x5b   : > { %vm305_vm7 = vmand %vm303_vm3, %vm926_vm11 }
  0x5c   : > { %vm306_vm9 = vmand %vm304_vm5, %vm931_vm12  ;;  %v319_v57 = vsel %vm318_vm4, %v315_v53, %v317_v55  ;;  %v327_v58 = vsel %vm305_vm7, 1, %v784_v2 }
  0x5d   : > { %vm312_vm10 = vmand %vm294_vm13, %vm310_vm6  ;;  %v328_v59 = vsel %vm306_vm9, 1, %v784_v2  ;;  %v320_v60 = vadd.s32 %v319_v57, %v314_v56 }
  0x5e   : > { %vm313_vm15 = vmand %vm295_vm14, %vm311_vm8  ;;  %v329_v61 = vrot.slane %v328_v59, 7  ;;  %v334_v63 = vsel %vm312_vm10, 1, %v784_v2 }
  0x5f   : > { %v335_v3 = vsel %vm313_vm15, 1, %v784_v2  ;;  %325 = vst.msk [vmem:[#allocation2] sm:$0x3] %vm905_vm0, %v320_v60 }
  0x60   : > { %v330_v4 = vsel %vm318_vm4, %v327_v58, %v329_v61  ;;  %v336_v6 = vrot.slane %v335_v3, 7 }
  0x61   : > { %v331_v7 = vadd.s32 %v330_v4, %v326_v62 }
  0x62   : > { %v337_v8 = vsel %vm318_vm4, %v334_v63, %v336_v6 }
  0x63   : > { %v338_v9 = vadd.s32 %v337_v8, %v333_v5  ;;  %332 = vst.msk [vmem:[#allocation3] sm:$0x3] %vm905_vm0, %v331_v7 }
  0x65   : > { %339 = vst.msk [vmem:[#allocation4] sm:$0x3] %vm905_vm0, %v338_v9 }
  0x66   : > { %v343_v10 = vld [vmem:[#allocation2] sm:$0x3] }
  0x67   : > { %v344_v11 = vperm.slane %v343_v10, 0  ;;  %v345_v2 = vperm.slane %v343_v10, 1 }
  0x69   : > { %v346_v12 = vsel %vm318_vm4, %v344_v11, 0  ;;  %v347_v13 = vsel %vm318_vm4, %v345_v2, 0 }
  0x6a   : > { %v348_v14 = vadd.s32 %v347_v13, %v346_v12  ;;  %v368_v15 = vld [vmem:[#allocation3] sm:$0x3]  ;;  %v419_v12 = vand.u32 127, %v226_v0 }
  0x6b   : > { %v369_v16 = vperm.slane %v368_v15, 0  ;;  %v370_v17 = vperm.slane %v368_v15, 1 }
  0x6c   : > { %v393_v18 = vld [vmem:[#allocation4] sm:$0x3]  ;;  %v350_v19 = vshrl.u32 %v348_v14, 16  ;;  %v349_v35 = vand.u32 65535, %v348_v14  ;;  %vm422_vm0 = vcmp.eq.s32.totalorder %v419_v12, 2  ;;  %vm421_vm11 = vcmp.eq.s32.totalorder %v419_v12, 1 }
  0x6d   : > { %v394_v20 = vperm.slane %v393_v18, 0  ;;  %v395_v21 = vperm.slane %v393_v18, 1  ;;  %v371_v22 = vsel %vm318_vm4, %v369_v16, 0  ;;  %v372_v1 = vsel %vm318_vm4, %v370_v17, 0 }
  0x6e   : > { %v352_v23 = vcvt.s32.f32 %v350_v19  ;;  %v373_v24 = vadd.s32 %v372_v1, %v371_v22  ;;  %v351_v37 = vcvt.s32.f32 %v349_v35  ;;  %vm420_vm12 = vcmp.eq.s32.totalorder %v419_v12, 0 }
  0x6f   : > { %v396_v25 = vsel %vm318_vm4, %v394_v20, 0  ;;  %v397_v26 = vsel %vm318_vm4, %v395_v21, 0 }
  0x70   : > { %v398_v27 = vadd.s32 %v397_v26, %v396_v25  ;;  %355 = vadd.xlane.f32.xlu0 %v352_v23  ;;  %v374_v28 = vand.u32 65535, %v373_v24  ;;  %v375_v29 = vshrl.u32 %v373_v24, 16 }
  0x72   : > { %v400_v30 = vshrl.u32 %v398_v27, 16  ;;  %v376_v31 = vcvt.s32.f32 %v374_v28  ;;  %v377_v33 = vcvt.s32.f32 %v375_v29  ;;  %v399_v34 = vand.u32 65535, %v398_v27 }
  0x74   : > { %v402_v32 = vcvt.s32.f32 %v400_v30  ;;  %378 = vadd.xlane.f32.xlu2 %v376_v31  ;;  %v401_v36 = vcvt.s32.f32 %v399_v34 }
  0x76   : > { %405 = vadd.xlane.f32.xlu1 %v402_v32 }
  0x78   : > { %380 = vadd.xlane.f32.xlu0 %v377_v33 }
  0x7c   : > { %403 = vadd.xlane.f32.xlu2 %v401_v36 }
  0x7e   : > { %353 = vadd.xlane.f32.xlu1 %v351_v37 }
  0xe3   : > { %v356_v38 = vpop.xlane.xlu0 %355 }
  0xe4   : > { %v358_v44 = vcvt.f32.s32 %v356_v38 }
  0xe6   : > { %v359_v52 = vshll.u32 %v358_v44, 16 }
  0xe7   : > { %v379_v39 = vpop.xlane.xlu2 %378 }
  0xe8   : > { %v382_v45 = vcvt.f32.s32 %v379_v39 }
  0xe9   : > { %v406_v40 = vpop.xlane.xlu1 %405 }
  0xea   : > { %v408_v42 = vcvt.f32.s32 %v406_v40 }
  0xeb   : > { %v381_v41 = vpop.xlane.xlu0 %380 }
  0xec   : > { %v383_v43 = vcvt.f32.s32 %v381_v41  ;;  %v409_v48 = vshll.u32 %v408_v42, 16 }
  0xee   : > { %v384_v46 = vshll.u32 %v383_v43, 16 }
  0xef   : > { %v404_v47 = vpop.xlane.xlu2 %403 }
  0xf0   : > { %v385_v49 = vadd.s32 %v384_v46, %v382_v45  ;;  %v407_v50 = vcvt.f32.s32 %v404_v47 }
  0xf1   : > { %v354_v51 = vpop.xlane.xlu1 %353 }
  0xf2   : > { %v386_v53 = vrot.slane %v385_v49, 4  ;;  %v357_v54 = vcvt.f32.s32 %v354_v51  ;;  %v410_v55 = vadd.s32 %v409_v48, %v407_v50 }
  0xf4   : > { %v387_v56 = vadd.s32 %v386_v53, %v385_v49  ;;  %v360_v57 = vadd.s32 %v359_v52, %v357_v54  ;;  %v411_v58 = vrot.slane %v410_v55, 4 }
  0xf6   : > { %v361_v59 = vrot.slane %v360_v57, 4  ;;  %v412_v60 = vadd.s32 %v411_v58, %v410_v55  ;;  %v388_v61 = vrot.slane %v387_v56, 2 }
  0xf8   : > { %v362_v62 = vadd.s32 %v361_v59, %v360_v57  ;;  %v389_v63 = vadd.s32 %v388_v61, %v387_v56  ;;  %v413_v3 = vrot.slane %v412_v60, 2 }
  0xfa   : > { %v363_v4 = vrot.slane %v362_v62, 2  ;;  %v414_v5 = vadd.s32 %v413_v3, %v412_v60  ;;  %v390_v6 = vrot.slane %v389_v63, 1 }
  0xfc   : > { %v364_v7 = vadd.s32 %v363_v4, %v362_v62  ;;  %v415_v8 = vrot.slane %v414_v5, 1  ;;  %v391_v10 = vadd.s32 %v390_v6, %v389_v63 }
  0xfe   : > { %v365_v9 = vrot.slane %v364_v7, 1  ;;  %v416_v2 = vadd.s32 %v415_v8, %v414_v5 }
 0x100   : > { %v366_v11 = vadd.s32 %v365_v9, %v364_v7 }
 0x102   : > { %560 = vpush %v366_v11 }
 0x103   : > { %562 = vpush %v391_v10 }
 0x104   : > { %564 = vpush %v416_v2 }
 0x133   : > { %s561_s15 = spop %560 }
 0x134   : > { %s563_s16 = spop %562  ;;  %v427_v15 = vstv %s561_s15 }
 0x135   : > { %v425_v13 = vstv %s563_s16  ;;  %s565_s26 = spop %564 }
 0x136   : > { %v423_v14 = vstv %s565_s26 }
 0x137   : > { %v424_v0 = vsel %vm422_vm0, %v423_v14, 0 }
 0x138   : > { %v426_v16 = vsel %vm421_vm11, %v425_v13, %v424_v0 }
 0x139   : > { %v428_v17 = vsel %vm420_vm12, %v427_v15, %v426_v16 }
 0x13a   : > { %429 = vst [vmem:[%s219_s18] sm:$0x1] %v428_v17 }
 0x13b   : > { %723 = shalt.err (!%p720_p13)
}
 0x13c   : > { %570 = dma.vmem_to_hbm [thread:$0]  (%p853_p9), %s442_s20, 16, %s444_s19, %s431_s12  }
 0x13d PF: > { %s455_s29 = sand.u32 1, %s762_s9   ;;  %p580_p0 = pnand %p548_p12, %p860_p11 }
 0x13e   : > { %s456_s6 = scalar_lea.sflag [#allocation7], %s455_s29 }
 0x13f   : > { %p581_p1 = pneg %p580_p0 }
 0x141   : > { %757 = dma.done.wait (%p581_p1), %s456_s6, 16  }
 0x142   : > { %759 = vsyncadd (%p581_p1), %s456_s6, 4294967280  ;;  %s21_s14 = sadd.s32 1, %s782_s14   ;;  %s1027_s9 = smov %s766_s10 }
 0x143   : > { %p18_p2 = scmp.ge.s32.totalorder %s21_s14, 4   ;;  %s1028_s10 = smov %s770_s11 }
 0x144   : > { %s1029_s11 = smov %s858_s23  ;;  %s1030_s12 = smov %s778_s13 }
 0x145   : > { %s1031_s13 = smov %s1033_s17  ;;  %20 = sbr.rel (!%p18_p2) target bundleno = 8 (0x8), region = 94 }
 0x14a   :  { %461 = vsyncpa [#allocation6], 1 }
 0x14b   :  { %463 = vsyncpa [#allocation6 + $0x1], 1 }
 0x14c   :  { %464 = vsyncpa [#allocation9], 1 }
 0x14d   :  { %466 = vsyncpa [#allocation9 + $0x1], 1 }
 0x14e   :  { %467 = vsyncpa [#allocation7], 1 }
 0x14f   :  { %469 = vsyncpa [#allocation7 + $0x1], 1 }

</bundles_post_ra>
